<compile_context>
chip_gen: v7x
topology: tpu7x:2x2x1
jax: 0.10.0
libtpu: 0.0.40
codegen_flags: <defaults>
</compile_context>

<pallas_src>
from functools import partial

import numpy as np
import jax
import jax.numpy as jnp
from jax import lax
from jax.experimental import pallas as pl
from jax.experimental.pallas import tpu as pltpu


_NODE_ALIGN = 4096     # tile granularity in nodes (= 512 lanes after the 8-sublane fold)
_TILE_MAX = 65536      # max nodes per grid step
_LANE_CHUNK = 512      # lanes per in-kernel accumulation chunk (4096 nodes)
_OUT_LANES = 128       # lane-dense per-tile partial row


def _cdiv(a, b):
    return -(-a // b)


# ----------------------------- Pallas kernel -------------------------------

def _node_ce_kernel(pred_ref, lab_ref, out_ref):
    """Per-tile CE(sum, ignore_index=-1) + argmax-correct count + valid count.

    pred_ref : (C*8, L) f32 -- class c occupies sublane slab rows [8c, 8c+8)
    lab_ref  : (8, L)   i32 -- -1 == ignore (also marks ragged-tail padding)
    out_ref  : (1, 8, 128) f32 -- [0,0,0]=loss, [0,0,1]=#correct, [0,0,2]=#valid
    """
    C = pred_ref.shape[0] // 8
    lanes = pred_ref.shape[1]
    chunk = min(_LANE_CHUNK, lanes)
    n_chunks = lanes // chunk

    zero = jnp.zeros((8, chunk), jnp.float32)

    def chunk_body(j, carry):
        loss_acc, corr_acc, valid_acc = carry
        col = pl.ds(pl.multiple_of(j * chunk, chunk), chunk)
        labels = lab_ref[:, col]                       # (8, chunk) int32
        valid = labels > -1

        # class slabs for this lane chunk (C is tiny; statically unrolled)
        rows = [pred_ref[pl.ds(c * 8, 8), col] for c in range(C)]

        m = rows[0]
        picked = jnp.where(labels == 0, rows[0], 0.0)
        best = rows[0]
        amax = jnp.zeros(labels.shape, jnp.int32)
        for c in range(1, C):
            row = rows[c]
            m = jnp.maximum(m, row)
            picked = jnp.where(labels == c, row, picked)
            better = row > best                        # strict > == np.argmax tie-break
            amax = jnp.where(better, c, amax)
            best = jnp.where(better, row, best)

        if C == 2:
            # sum_c exp(p_c - max) == 1 + exp(-|p0 - p1|): 1 exp + 1 log / node
            lse = m + jnp.log(1.0 + jnp.exp(-jnp.abs(rows[0] - rows[1])))
        else:
            sexp = jnp.exp(rows[0] - m)
            for c in range(1, C):
                sexp = sexp + jnp.exp(rows[c] - m)
            lse = m + jnp.log(sexp)

        # numerically-stable cross entropy: logsumexp(logits) - logits[label]
        loss_acc = loss_acc + jnp.where(valid, lse - picked, 0.0)
        corr_acc = corr_acc + jnp.where(valid & (amax == labels), 1.0, 0.0)
        valid_acc = valid_acc + jnp.where(valid, 1.0, 0.0)
        return loss_acc, corr_acc, valid_acc

    loss_acc, corr_acc, valid_acc = lax.fori_loop(
        0, n_chunks, chunk_body, (zero, zero, zero), unroll=True)

    loss = jnp.sum(loss_acc)
    n_correct = jnp.sum(corr_acc)
    n_valid = jnp.sum(valid_acc)

    lane = lax.broadcasted_iota(jnp.int32, (8, _OUT_LANES), 1)
    sub = lax.broadcasted_iota(jnp.int32, (8, _OUT_LANES), 0)
    row0 = jnp.where(lane == 0, loss,
                     jnp.where(lane == 1, n_correct,
                               jnp.where(lane == 2, n_valid, 0.0)))
    out_ref[0] = jnp.where(sub == 0, row0, 0.0)


@partial(jax.jit, static_argnames=("tile",))
def _node_ce_device(pred_t, labels, *, tile):
    """pred_t: (C*8, N_pad/8) f32, labels: (8, N_pad/8) i32 -> (3,) f32 sums."""
    c8, n_lanes = pred_t.shape
    C = c8 // 8
    lanes = tile // 8
    assert n_lanes % lanes == 0 and lanes % 128 == 0
    num_tiles = n_lanes // lanes
    n_pad = n_lanes * 8
    cost = pl.CostEstimate(
        flops=16 * C * n_pad,
        transcendentals=(2 if C == 2 else (C + 1)) * n_pad,
        bytes_accessed=(C * 4 + 4) * n_pad + num_tiles * 8 * _OUT_LANES * 4)
    partials = pl.pallas_call(
        _node_ce_kernel,
        out_shape=jax.ShapeDtypeStruct((num_tiles, 8, _OUT_LANES), jnp.float32),
        grid=(num_tiles,),
        in_specs=[pl.BlockSpec((c8, lanes), lambda i: (0, i)),
                  pl.BlockSpec((8, lanes), lambda i: (0, i))],
        out_specs=pl.BlockSpec((1, 8, _OUT_LANES), lambda i: (i, 0, 0)),
        compiler_params=pltpu.CompilerParams(
            dimension_semantics=("parallel",)),        # core-splittable tile axis
        cost_estimate=cost,
    )(pred_t, labels)
    return jnp.sum(partials, axis=(0, 1))[:3]          # [loss_sum, n_correct, n_valid]


def _choose_tiling(n):
    """Pick (tile, n_pad): avoid ~2x padding for n just over a tile multiple,
    while bucketing tile to multiples of _NODE_ALIGN (few distinct compiles)."""
    num_tiles = max(1, _cdiv(n, _TILE_MAX))
    tile = _cdiv(_cdiv(n, num_tiles), _NODE_ALIGN) * _NODE_ALIGN
    tile = min(max(tile, _NODE_ALIGN), _TILE_MAX)
    num_tiles = max(1, _cdiv(n, tile))
    return tile, num_tiles * tile


def node_ce_pallas(node_pred, node_assn):
    """node_pred: (N, C) float, node_assn: (N,) int (-1 = ignore).
    Returns (loss_sum, n_correct, n_valid) as python floats."""
    node_pred = np.asarray(node_pred, dtype=np.float32)   # (N, C)
    node_assn = np.asarray(node_assn, dtype=np.int32)     # (N,)
    n, c = node_pred.shape
    tile, n_pad = _choose_tiling(n)
    n_lanes = n_pad // 8

    # sublane-dense relayout + padding done host-side (no device-side concat):
    #   node k (class cc) -> pred_t[cc*8 + k // n_lanes, k % n_lanes]
    #   node k label      -> labels[k // n_lanes, k % n_lanes]
    pred_pad = np.zeros((n_pad, c), dtype=np.float32)
    pred_pad[:n] = node_pred
    pred_t = np.ascontiguousarray(
        pred_pad.T.reshape(c, 8, n_lanes)).reshape(c * 8, n_lanes)
    lab_pad = np.full((n_pad,), -1, dtype=np.int32)
    lab_pad[:n] = node_assn
    labels = lab_pad.reshape(8, n_lanes)

    out = _node_ce_device(jnp.asarray(pred_t), jnp.asarray(labels), tile=tile)
    out = np.asarray(jax.device_get(out))                  # single host round-trip
    return float(out[0]), float(out[1]), float(out[2])


# ------------------------------ glue (host) --------------------------------

def get_cluster_label(labels, clusts, column):
    """Majority vote of `column` within each cluster (mlreco semantics)."""
    out = []
    for cl in clusts:
        v, cts = np.unique(labels[cl, column], return_counts=True)
        out.append(int(v[np.argmax(cts)]))
    return np.array(out, dtype=np.int64)


class NodeTypeLossPallas:
    """Mirrors NodeTypeLoss(loss='CE', reduction='sum', balance_classes=False)."""

    def __init__(self, loss_config, batch_col=3):
        self.batch_col = batch_col
        self.target_col = loss_config.get('target_col', 7)
        self.loss = loss_config.get('loss', 'CE')
        self.reduction = loss_config.get('reduction', 'sum')
        assert self.loss == 'CE' and self.reduction == 'sum'
        # TODO(synk): 'MM'/'EVD' losses, high_purity and balance_classes branches
        # are not implemented in this synthetic kernel (defaults are off).

    def forward(self, out, types):
        preds, assns = [], []
        n_clusts = 0
        for i in range(len(types)):
            if 'node_pred' not in out:
                continue
            batches = np.asarray(types[i])[:, self.batch_col]
            nbatches = len(np.unique(batches))
            for j in range(nbatches):
                labels = np.asarray(types[i])[batches == j]
                node_pred = np.asarray(out['node_pred'][i][j])
                if not node_pred.shape[0]:
                    continue
                clusts = out['clusts'][i][j]
                node_assn = get_cluster_label(labels, clusts,
                                              column=self.target_col)
                # the > -1 mask guards the (possibly negative-index) gather used
                # for the -inf check, same as the reference
                valid_mask = node_assn > -1
                valid_mask &= (node_pred[np.arange(len(node_assn)), node_assn]
                               != -np.inf)
                valid_mask = np.where(valid_mask)[0]
                if len(valid_mask):
                    preds.append(node_pred[valid_mask])
                    assns.append(node_assn[valid_mask])
                    n_clusts += len(valid_mask)

        if n_clusts == 0:
            return {'accuracy': 1.0, 'loss': 0.0, 'n_clusts': 0}

        all_pred = np.concatenate(preds, axis=0).astype(np.float32)
        all_assn = np.concatenate(assns, axis=0).astype(np.int32)
        loss_sum, n_correct, n_valid = node_ce_pallas(all_pred, all_assn)
        assert int(round(n_valid)) == n_clusts
        return {'accuracy': n_correct / n_clusts,
                'loss': loss_sum / n_clusts,
                'n_clusts': n_clusts}


# ------------------------------- reference ---------------------------------

def _reference(out, types, batch_col=3, target_col=7):
    """Plain-numpy replica of the PyTorch forward (CE sum, no balancing)."""
    total_loss, total_acc, n_clusts = 0.0, 0.0, 0
    for i in range(len(types)):
        batches = np.asarray(types[i])[:, batch_col]
        for j in range(len(np.unique(batches))):
            labels = np.asarray(types[i])[batches == j]
            node_pred = np.asarray(out['node_pred'][i][j], dtype=np.float64)
            if not node_pred.shape[0]:
                continue
            clusts = out['clusts'][i][j]
            node_assn = get_cluster_label(labels, clusts, column=target_col)
            vm = node_assn > -1
            vm &= node_pred[np.arange(len(node_assn)), node_assn] != -np.inf
            vm = np.where(vm)[0]
            if len(vm):
                p, a = node_pred[vm], node_assn[vm]
                m = p.max(axis=1, keepdims=True)
                lse = m[:, 0] + np.log(np.exp(p - m).sum(axis=1))
                total_loss += float(np.sum(lse - p[np.arange(len(a)), a]))
                total_acc += float(np.sum(np.argmax(p, axis=1) == a))
                n_clusts += len(vm)
    return {'accuracy': total_acc / n_clusts if n_clusts else 1.0,
            'loss': total_loss / n_clusts if n_clusts else 0.0,
            'n_clusts': n_clusts}


# --------------------------------- main -------------------------------------

if __name__ == "__main__":
    key = jax.random.PRNGKey(0)
    rng = np.random.default_rng(0)

    nbatches = 2
    clusts_per_batch = [5, 4]
    vox_per_clust = 3
    n_classes = 2

    types_rows, clusts_all, node_pred_all = [], [], []
    for j in range(nbatches):
        nclu = clusts_per_batch[j]
        # within-batch voxel indices grouped into clusters
        clusts_j = [np.arange(c * vox_per_clust, (c + 1) * vox_per_clust)
                    for c in range(nclu)]
        clusts_all.append(clusts_j)
        # per-cluster target class (one cluster per batch is -1 -> ignored)
        targets = rng.integers(0, n_classes, size=nclu)
        targets[-1] = -1
        for c in range(nclu):
            for _ in range(vox_per_clust):
                x, y, z = rng.uniform(0, 16, size=3)
                value = rng.uniform(0.1, 1.0)
                vid = len(types_rows)
                groupid = c
                pdg = targets[c]
                types_rows.append([x, y, z, float(j), value, float(vid),
                                   float(groupid), float(pdg)])
        # two-channel node predictions for this batch
        key, sub = jax.random.split(key)
        node_pred_all.append(np.asarray(
            jax.random.normal(sub, (nclu, n_classes), dtype=jnp.float32)))

    types = [np.asarray(types_rows, dtype=np.float64)]           # (N_vox, 8)
    out = {'node_pred': [node_pred_all], 'clusts': [clusts_all]}

    loss_fn = NodeTypeLossPallas({'loss': 'CE', 'reduction': 'sum',
                                  'target_col': 7}, batch_col=3)
    res = loss_fn.forward(out, types)
    jax.block_until_ready(jnp.asarray(res['loss']))

    ref = _reference(out, types, batch_col=3, target_col=7)
    assert res['n_clusts'] == ref['n_clusts']
    assert abs(res['loss'] - ref['loss']) < 1e-4, (res, ref)
    assert abs(res['accuracy'] - ref['accuracy']) < 1e-6, (res, ref)

    print("KERNEL_OK")
</pallas_src>

<mosaic_0001>
module attributes {stable_mosaic.version = 11 : i64} {
  func.func @_node_ce_kernel(%arg0: i32, %arg1: memref<16x512xf32, #tpu.memory_space<vmem>>, %arg2: memref<8x512xi32, #tpu.memory_space<vmem>>, %arg3: memref<1x8x128xf32, #tpu.memory_space<vmem>>) attributes {dimension_semantics = [#tpu.dimension_semantics<parallel>], iteration_bounds = array<i64: 1>, scalar_prefetch = 0 : i64, scratch_operands = 0 : i64, tpu.core_type = #tpu.core_type<tc>, window_params = [{transform_indices = @transform_0, window_bounds = array<i64: 16, 512>}, {transform_indices = @transform_1, window_bounds = array<i64: 8, 512>}, {transform_indices = @transform_2, window_bounds = array<i64: 1, 8, 128>}]} {
    %cst = arith.constant 0.000000e+00 : f32
    %0 = vector.broadcast %cst : f32 to vector<8x512xf32>
    %c0_i32 = arith.constant 0 : i32
    %c512_i32 = arith.constant 512 : i32
    %1 = arith.muli %c0_i32, %c512_i32 : i32
    %2 = tpu.assume_multiple %1, 512 : i32
    %c0 = arith.constant 0 : index
    %3 = arith.index_cast %2 : i32 to index
    %4 = vector.load %arg2[%c0, %3] : memref<8x512xi32, #tpu.memory_space<vmem>>, vector<8x512xi32>
    %c-1_i32 = arith.constant -1 : i32
    %5 = vector.broadcast %c-1_i32 : i32 to vector<8x512xi32>
    %6 = arith.cmpi sgt, %4, %5 : vector<8x512xi32>
    %c0_0 = arith.constant 0 : index
    %7 = arith.index_cast %2 : i32 to index
    %8 = vector.load %arg1[%c0_0, %7] : memref<16x512xf32, #tpu.memory_space<vmem>>, vector<8x512xf32>
    %c8 = arith.constant 8 : index
    %9 = arith.index_cast %2 : i32 to index
    %10 = vector.load %arg1[%c8, %9] : memref<16x512xf32, #tpu.memory_space<vmem>>, vector<8x512xf32>
    %c0_i32_1 = arith.constant 0 : i32
    %11 = vector.broadcast %c0_i32_1 : i32 to vector<8x512xi32>
    %12 = arith.cmpi eq, %4, %11 : vector<8x512xi32>
    %cst_2 = arith.constant 0.000000e+00 : f32
    %13 = vector.broadcast %cst_2 : f32 to vector<8x512xf32>
    %14 = arith.select %12, %8, %13 : vector<8x512xi1>, vector<8x512xf32>
    %c0_i32_3 = arith.constant 0 : i32
    %15 = vector.broadcast %c0_i32_3 : i32 to vector<8x512xi32>
    %16 = arith.maximumf %8, %10 : vector<8x512xf32>
    %c1_i32 = arith.constant 1 : i32
    %17 = vector.broadcast %c1_i32 : i32 to vector<8x512xi32>
    %18 = arith.cmpi eq, %4, %17 : vector<8x512xi32>
    %19 = arith.select %18, %10, %14 : vector<8x512xi1>, vector<8x512xf32>
    %20 = arith.cmpf ogt, %10, %8 : vector<8x512xf32>
    %c1_i32_4 = arith.constant 1 : i32
    %21 = vector.broadcast %c1_i32_4 : i32 to vector<8x512xi32>
    %22 = arith.select %20, %21, %15 : vector<8x512xi1>, vector<8x512xi32>
    %23 = arith.subf %8, %10 : vector<8x512xf32>
    %24 = math.absf %23 : vector<8x512xf32>
    %cst_5 = arith.constant 0.000000e+00 : f32
    %25 = vector.broadcast %cst_5 : f32 to vector<8x512xf32>
    %26 = arith.subf %25, %24 : vector<8x512xf32>
    %27 = math.exp %26 : vector<8x512xf32>
    %cst_6 = arith.constant 1.000000e+00 : f32
    %28 = vector.broadcast %cst_6 : f32 to vector<8x512xf32>
    %29 = arith.addf %28, %27 : vector<8x512xf32>
    %30 = math.log %29 : vector<8x512xf32>
    %31 = arith.addf %16, %30 : vector<8x512xf32>
    %32 = arith.subf %31, %19 : vector<8x512xf32>
    %cst_7 = arith.constant 0.000000e+00 : f32
    %33 = vector.broadcast %cst_7 : f32 to vector<8x512xf32>
    %34 = arith.select %6, %32, %33 : vector<8x512xi1>, vector<8x512xf32>
    %35 = arith.addf %0, %34 : vector<8x512xf32>
    %36 = arith.cmpi eq, %22, %4 : vector<8x512xi32>
    %37 = arith.andi %6, %36 : vector<8x512xi1>
    %cst_8 = arith.constant 1.000000e+00 : f32
    %cst_9 = arith.constant 0.000000e+00 : f32
    %38 = vector.broadcast %cst_8 : f32 to vector<8x512xf32>
    %39 = vector.broadcast %cst_9 : f32 to vector<8x512xf32>
    %40 = arith.select %37, %38, %39 : vector<8x512xi1>, vector<8x512xf32>
    %41 = arith.addf %0, %40 : vector<8x512xf32>
    %cst_10 = arith.constant 1.000000e+00 : f32
    %cst_11 = arith.constant 0.000000e+00 : f32
    %42 = vector.broadcast %cst_10 : f32 to vector<8x512xf32>
    %43 = vector.broadcast %cst_11 : f32 to vector<8x512xf32>
    %44 = arith.select %6, %42, %43 : vector<8x512xi1>, vector<8x512xf32>
    %45 = arith.addf %0, %44 : vector<8x512xf32>
    %c1_i32_12 = arith.constant 1 : i32
    %46 = vector.shape_cast %35 : vector<8x512xf32> to vector<1x8x512xf32>
    %cst_13 = arith.constant dense<0.000000e+00> : vector<1xf32>
    %47 = vector.multi_reduction <add>, %46, %cst_13 [1, 2] : vector<1x8x512xf32> to vector<1xf32>
    %48 = vector.shape_cast %47 : vector<1xf32> to vector<1x1x1xf32>
    %49 = vector.extract %48[0, 0, 0] : f32 from vector<1x1x1xf32>
    %50 = vector.shape_cast %41 : vector<8x512xf32> to vector<1x8x512xf32>
    %cst_14 = arith.constant dense<0.000000e+00> : vector<1xf32>
    %51 = vector.multi_reduction <add>, %50, %cst_14 [1, 2] : vector<1x8x512xf32> to vector<1xf32>
    %52 = vector.shape_cast %51 : vector<1xf32> to vector<1x1x1xf32>
    %53 = vector.extract %52[0, 0, 0] : f32 from vector<1x1x1xf32>
    %54 = vector.shape_cast %45 : vector<8x512xf32> to vector<1x8x512xf32>
    %cst_15 = arith.constant dense<0.000000e+00> : vector<1xf32>
    %55 = vector.multi_reduction <add>, %54, %cst_15 [1, 2] : vector<1x8x512xf32> to vector<1xf32>
    %56 = vector.shape_cast %55 : vector<1xf32> to vector<1x1x1xf32>
    %57 = vector.extract %56[0, 0, 0] : f32 from vector<1x1x1xf32>
    %58 = tpu.iota {dimensions = array<i32: 1>} : vector<8x128xi32>
    %59 = tpu.iota {dimensions = array<i32: 0>} : vector<8x128xi32>
    %c0_i32_16 = arith.constant 0 : i32
    %60 = vector.broadcast %c0_i32_16 : i32 to vector<8x128xi32>
    %61 = arith.cmpi eq, %58, %60 : vector<8x128xi32>
    %c1_i32_17 = arith.constant 1 : i32
    %62 = vector.broadcast %c1_i32_17 : i32 to vector<8x128xi32>
    %63 = arith.cmpi eq, %58, %62 : vector<8x128xi32>
    %c2_i32 = arith.constant 2 : i32
    %64 = vector.broadcast %c2_i32 : i32 to vector<8x128xi32>
    %65 = arith.cmpi eq, %58, %64 : vector<8x128xi32>
    %cst_18 = arith.constant 0.000000e+00 : f32
    %66 = vector.broadcast %57 : f32 to vector<8x128xf32>
    %67 = vector.broadcast %cst_18 : f32 to vector<8x128xf32>
    %68 = arith.select %65, %66, %67 : vector<8x128xi1>, vector<8x128xf32>
    %69 = vector.broadcast %53 : f32 to vector<8x128xf32>
    %70 = arith.select %63, %69, %68 : vector<8x128xi1>, vector<8x128xf32>
    %71 = vector.broadcast %49 : f32 to vector<8x128xf32>
    %72 = arith.select %61, %71, %70 : vector<8x128xi1>, vector<8x128xf32>
    %c0_i32_19 = arith.constant 0 : i32
    %73 = vector.broadcast %c0_i32_19 : i32 to vector<8x128xi32>
    %74 = arith.cmpi eq, %59, %73 : vector<8x128xi32>
    %cst_20 = arith.constant 0.000000e+00 : f32
    %75 = vector.broadcast %cst_20 : f32 to vector<8x128xf32>
    %76 = arith.select %74, %72, %75 : vector<8x128xi1>, vector<8x128xf32>
    %c0_21 = arith.constant 0 : index
    %c0_22 = arith.constant 0 : index
    %c0_23 = arith.constant 0 : index
    %77 = vector.load %arg3[%c0_21, %c0_22, %c0_23] : memref<1x8x128xf32, #tpu.memory_space<vmem>>, vector<1x8x128xf32>
    %78 = vector.shape_cast %77 : vector<1x8x128xf32> to vector<8x128xf32>
    %79 = vector.shape_cast %76 : vector<8x128xf32> to vector<1x8x128xf32>
    tpu.vector_store %arg3[%c0_21, %c0_22, %c0_23], %79 {strides = array<i32>} : memref<1x8x128xf32, #tpu.memory_space<vmem>>, vector<1x8x128xf32>,
    return
  }
  func.func @transform_0(%arg0: i32) -> (i32, i32) {
    %c0_i32 = arith.constant 0 : i32
    %c0_i32_0 = arith.constant 0 : i32
    return %c0_i32, %arg0 : i32, i32
  }
  func.func @transform_1(%arg0: i32) -> (i32, i32) {
    %c0_i32 = arith.constant 0 : i32
    %c0_i32_0 = arith.constant 0 : i32
    return %c0_i32, %arg0 : i32, i32
  }
  func.func @transform_2(%arg0: i32) -> (i32, i32, i32) {
    %c0_i32 = arith.constant 0 : i32
    %c0_i32_0 = arith.constant 0 : i32
    %c0_i32_1 = arith.constant 0 : i32
    return %arg0, %c0_i32, %c0_i32_0 : i32, i32, i32
  }
}

</mosaic_0001>

<bundles_post_ra>
// kernel: _node_ce_device.1
= control target key start
LH: loop header
LB: loop body
LE: loop exit
PB: predicated region body
PF: predicated region fallthrough
CT: control target
= control target key end

     0   :  { %7 = vsyncpa [#allocation3], 0  ;;  %s456_s0 = inlined_call_operand.hbm [shape: f32[16,512], index: 0, kind: input, shape index: {}]   ;;  %s457_s1 = inlined_call_operand.hbm [shape: s32[8,512], index: 1, kind: input, shape index: {}]   ;;  %s458_s2 = inlined_call_operand.vmem [shape: f32[1,8,128], index: 2, kind: output, shape index: {}]  }
   0x1   :  { %8 = vsyncpa [#allocation5], 0  ;;  %s287_s9 = smov [#allocation2]   ;;  %s239_s13 = scalar_lea.hbm %s456_s0, 1024 }
   0x2   :  { %s14_s10 = sshll.u32 %s287_s9, 4  ;;  %p240_p0 = scmp.ne.s32.totalorder %s456_s0, %s239_s13  ;;  %s15_s10 = int_to_ptr.vmem [resolvable:$true] %s14_s10 }
   0x3   :  { %p243_p1 = scmp.lt.u32.totalorder %s239_s13, %s456_s0 }
   0x5   :  { %p245_p2 = pnand %p243_p1, %p240_p0 }
   0x7   :  { %248 = shalt.err (!%p245_p2)
}
   0x8   :  { %s249_s18 = scalar_lea.vmem %s15_s10, 1024  ;;  %p254_p4 = scmp.lt.s32.totalorder %s15_s10, %s15_s10 }
   0x9   :  { %p250_p3 = scmp.ne.s32.totalorder %s15_s10, %s249_s18  ;;  %p255_p5 = scmp.lt.s32.totalorder %s249_s18, %s249_s18 }
   0xb   :  { %p256_p6 = por %p255_p5, %p254_p4 }
   0xd   :  { %p257_p7 = pnand %p256_p6, %p250_p3 }
   0xf   :  { %260 = shalt.err (!%p257_p7)
}
  0x10   :  { %s288_s19 = smov 512   ;;  %s289_s20 = smov 32  }
  0x11   :  { %20 = dma.hbm_to_vmem [thread:$0]  %s456_s0, 1024, %s15_s10, [#allocation3], %s288_s19, %s288_s19, %s289_s20  }
  0x12   :  { %s290_s23 = smov [#allocation4]   ;;  %s261_s27 = scalar_lea.hbm %s457_s1, 512 }
  0x13   :  { %s27_s24 = sshll.u32 %s290_s23, 4  ;;  %p262_p8 = scmp.ne.s32.totalorder %s457_s1, %s261_s27  ;;  %s28_s24 = int_to_ptr.vmem [resolvable:$true] %s27_s24 }
  0x14   :  { %p265_p9 = scmp.lt.u32.totalorder %s261_s27, %s457_s1 }
  0x16   :  { %p267_p10 = pnand %p265_p9, %p262_p8 }
  0x18   :  { %270 = shalt.err (!%p267_p10)
}
  0x19   :  { %s271_s4 = scalar_lea.vmem %s28_s24, 512  ;;  %p276_p12 = scmp.lt.s32.totalorder %s28_s24, %s28_s24 }
  0x1a   :  { %p272_p11 = scmp.ne.s32.totalorder %s28_s24, %s271_s4  ;;  %p277_p13 = scmp.lt.s32.totalorder %s271_s4, %s271_s4 }
  0x1c   :  { %p278_p0 = por %p277_p13, %p276_p12 }
  0x1e   :  { %p279_p1 = pnand %p278_p0, %p272_p11 }
  0x20   :  { %282 = shalt.err (!%p279_p1)
}
  0x21   :  { %30 = dma.hbm_to_vmem [thread:$0]  %s457_s1, 512, %s28_s24, [#allocation5]  }
  0x22   :  { %283 = dma.done.wait [#allocation3], 1024  }
  0x23   :  { %284 = vsyncadd [#allocation3], 4294966272 }
  0x24   :  { %285 = dma.done.wait [#allocation5], 512  }
  0x25   :  { %286 = vsyncadd [#allocation5], 4294966784  ;;  %v332_v0 = vld [vmem:[#allocation4] sm:$0xff]  ;;  %v334_v1 = vld [vmem:[#allocation4 + $0x8] sm:$0xff]  ;;  %v291_v4 = vmov 0.0   ;;  %v292_v44 = vmov 0  }
  0x26   :  { %v336_v2 = vld [vmem:[#allocation4 + $0x10] sm:$0xff]  ;;  %v338_v3 = vld [vmem:[#allocation4 + $0x18] sm:$0xff]  ;;  %vm41_vm0 = vcmp.gt.s32.totalorder %v332_v0, 4294967295  ;;  %vm42_vm1 = vcmp.gt.s32.totalorder %v334_v1, 4294967295  ;;  %v356_v10 = vld [vmem:[#allocation2] sm:$0xff]  ;;  %vm53_vm6 = vcmp.eq.s32.totalorder %v332_v0, 0 }
  0x27   :  { %vm43_vm2 = vcmp.gt.s32.totalorder %v336_v2, 4294967295  ;;  %vm44_vm3 = vcmp.gt.s32.totalorder %v338_v3, 4294967295  ;;  %v145_v5 = vsel %vm41_vm0, 1.0, %v291_v4  ;;  %v146_v6 = vsel %vm42_vm1, 1.0, %v291_v4  ;;  %v358_v11 = vld [vmem:[#allocation2 + $0x8] sm:$0xff]  ;;  %v360_v13 = vld [vmem:[#allocation2 + $0x10] sm:$0xff] }
  0x28   :  { %v147_v7 = vsel %vm43_vm2, 1.0, %v291_v4  ;;  %v177_v8 = vadd.f32 %v146_v6, %v145_v5  ;;  %v148_v9 = vsel %vm44_vm3, 1.0, %v291_v4  ;;  %v362_v14 = vld [vmem:[#allocation2 + $0x18] sm:$0xff]  ;;  %v364_v15 = vld [vmem:[#allocation2 + $0x20] sm:$0xff]  ;;  %v366_v16 = vld [vmem:[#allocation2 + $0x28] sm:$0xff]  ;;  %vm54_vm7 = vcmp.eq.s32.totalorder %v334_v1, 0 }
  0x29   :  { %v368_v17 = vld [vmem:[#allocation2 + $0x30] sm:$0xff]  ;;  %v370_v18 = vld [vmem:[#allocation2 + $0x38] sm:$0xff]  ;;  %v81_v20 = vsub.f32 %v356_v10, %v364_v15  ;;  %v82_v21 = vsub.f32 %v358_v11, %v366_v16  ;;  %vm73_vm4 = vcmp.gt.f32.partialorder %v364_v15, %v356_v10  ;;  %vm74_vm5 = vcmp.gt.f32.partialorder %v366_v16, %v358_v11 }
  0x2a   :  { %v178_v12 = vadd.f32 %v177_v8, %v147_v7  ;;  %v83_v22 = vsub.f32 %v360_v13, %v368_v17  ;;  %v84_v23 = vsub.f32 %v362_v14, %v370_v18  ;;  %v77_v45 = vsel %vm73_vm4, 1, %v292_v44 }
  0x2b   :  { %v85_v24 = vand.u32 2147483647, %v81_v20  ;;  %v86_v25 = vand.u32 2147483647, %v82_v21  ;;  %vm55_vm8 = vcmp.eq.s32.totalorder %v336_v2, 0  ;;  %v78_v46 = vsel %vm74_vm5, 1, %v292_v44 }
  0x2c   :  { %v179_v19 = vadd.f32 %v178_v12, %v148_v9  ;;  %v87_v26 = vand.u32 2147483647, %v83_v22  ;;  %v88_v27 = vand.u32 2147483647, %v84_v23  ;;  %vm75_vm9 = vcmp.gt.f32.partialorder %v368_v17, %v360_v13 }
  0x2d   :  { %v89_v28 = vsub.f32 0.0, %v85_v24  ;;  %v90_v29 = vsub.f32 0.0, %v86_v25  ;;  %vm56_vm10 = vcmp.eq.s32.totalorder %v338_v3, 0  ;;  %vm129_vm11 = vcmp.eq.s32.totalorder %v77_v45, %v332_v0 }
  0x2e   :  { %180 = vadd.xlane.f32.xlu1 %v179_v19  ;;  %v91_v30 = vsub.f32 0.0, %v87_v26  ;;  %v92_v31 = vsub.f32 0.0, %v88_v27  ;;  %v57_v47 = vsel %vm53_vm6, %v356_v10, 0.0  ;;  %v58_v48 = vsel %vm54_vm7, %v358_v11, 0.0  ;;  %vm407_vm5 = vmand %vm41_vm0, %vm129_vm11 }
  0x2f   :  { %v93_v32 = vmul.f32 1.442695, %v89_v28  ;;  %v95_v33 = vmul.f32 1.442695, %v90_v29  ;;  %v59_v49 = vsel %vm55_vm8, %v360_v13, 0.0  ;;  %vm130_vm12 = vcmp.eq.s32.totalorder %v78_v46, %v334_v1 }
  0x30   :  { %v97_v34 = vmul.f32 1.442695, %v91_v30  ;;  %v99_v35 = vmul.f32 1.442695, %v92_v31  ;;  %v61_v50 = vmax.f32 %v356_v10, %v364_v15  ;;  %vm65_vm13 = vcmp.eq.s32.totalorder %v332_v0, 1  ;;  %vm134_vm7 = vmand %vm42_vm1, %vm130_vm12 }
  0x31   :  { %223 = vpow2.f32 %v93_v32  ;;  %vm66_vm14 = vcmp.eq.s32.totalorder %v334_v1, 1  ;;  %v79_v51 = vsel %vm75_vm9, 1, %v292_v44  ;;  %v60_v53 = vsel %vm56_vm10, %v362_v14, 0.0 }
  0x32   :  { %225 = vpow2.f32 %v95_v33  ;;  %v62_v54 = vmax.f32 %v358_v11, %v366_v16  ;;  %vm67_vm15 = vcmp.eq.s32.totalorder %v336_v2, 1  ;;  %vm76_vm4 = vcmp.gt.f32.partialorder %v370_v18, %v362_v14 }
  0x33   :  { %227 = vpow2.f32 %v97_v34  ;;  %v63_v57 = vmax.f32 %v360_v13, %v368_v17  ;;  %v64_v58 = vmax.f32 %v362_v14, %v370_v18  ;;  %vm68_vm6 = vcmp.eq.s32.totalorder %v338_v3, 1 }
  0x34   :  { %229 = vpow2.f32 %v99_v35  ;;  %v69_v61 = vsel %vm65_vm13, %v364_v15, %v57_v47  ;;  %v70_v62 = vsel %vm66_vm14, %v366_v16, %v58_v48  ;;  %vm131_vm8 = vcmp.eq.s32.totalorder %v79_v51, %v336_v2 }
  0x35   :  { %v71_v6 = vsel %vm67_vm15, %v368_v17, %v59_v49  ;;  %v80_v9 = vsel %vm76_vm4, 1, %v292_v44  ;;  %v137_v12 = vsel %vm407_vm5, 1.0, %v291_v4  ;;  %v138_v13 = vsel %vm134_vm7, 1.0, %v291_v4  ;;  %vm135_vm9 = vmand %vm43_vm2, %vm131_vm8 }
  0x36   :  { %v72_v15 = vsel %vm68_vm6, %v370_v18, %v60_v53  ;;  %vm132_vm10 = vcmp.eq.s32.totalorder %v80_v9, %v338_v3  ;;  %v165_v22 = vadd.f32 %v138_v13, %v137_v12  ;;  %v139_v18 = vsel %vm135_vm9, 1.0, %v291_v4 }
  0x37   :  { %vm136_vm11 = vmand %vm44_vm3, %vm132_vm10  ;;  %v189_v49 = vlaneseq }
  0x38   :  { %v166_v0 = vadd.f32 %v165_v22, %v139_v18  ;;  %v140_v29 = vsel %vm136_vm11, 1.0, %v291_v4 }
  0x39   :  { %v192_v51 = vshrl.u32 %v189_v49, 7 }
  0x3a   :  { %v167_v1 = vadd.f32 %v166_v0, %v140_v29 }
  0x3b   :  { %v224_v36 = vpop.eup %223 }
  0x3c   :  { %v226_v37 = vpop.eup %225  ;;  %v101_v38 = vadd.f32 1.0, %v224_v36 }
  0x3d   :  { %v228_v39 = vpop.eup %227  ;;  %v102_v40 = vadd.f32 1.0, %v226_v37 }
  0x3e   :  { %v230_v41 = vpop.eup %229  ;;  %v103_v42 = vadd.f32 1.0, %v228_v39  ;;  %231 = vlog2.f32 %v101_v38 }
  0x3f   :  { %v104_v43 = vadd.f32 1.0, %v230_v41  ;;  %233 = vlog2.f32 %v102_v40 }
  0x40   :  { %235 = vlog2.f32 %v103_v42 }
  0x41   :  { %237 = vlog2.f32 %v104_v43 }
  0x48   :  { %v232_v52 = vpop.eup %231 }
  0x49   :  { %v234_v56 = vpop.eup %233  ;;  %v106_v59 = vmul.f32 0.6931472, %v232_v52 }
  0x4a   :  { %v236_v60 = vpop.eup %235  ;;  %v108_v63 = vmul.f32 0.6931472, %v234_v56 }
  0x4b   :  { %v238_v5 = vpop.eup %237  ;;  %v110_v7 = vmul.f32 0.6931472, %v236_v60  ;;  %v113_v8 = vadd.f32 %v106_v59, %v61_v50  ;;  %v190_v50 = vand.u32 127, %v189_v49 }
  0x4c   :  { %v112_v10 = vmul.f32 0.6931472, %v238_v5  ;;  %v114_v11 = vadd.f32 %v108_v63, %v62_v54 }
  0x4d   :  { %v115_v16 = vadd.f32 %v110_v7, %v63_v57  ;;  %v117_v17 = vsub.f32 %v113_v8, %v69_v61 }
  0x4e   :  { %v116_v19 = vadd.f32 %v112_v10, %v64_v58  ;;  %v118_v14 = vsub.f32 %v114_v11, %v70_v62 }
  0x4f   :  { %v119_v20 = vsub.f32 %v115_v16, %v71_v6  ;;  %v121_v21 = vsel %vm41_vm0, %v117_v17, 0.0  ;;  %vm195_vm0 = vcmp.eq.s32.totalorder %v190_v50, 2 }
  0x50   :  { %v120_v23 = vsub.f32 %v116_v19, %v72_v15  ;;  %v122_v24 = vsel %vm42_vm1, %v118_v14, 0.0  ;;  %vm194_vm1 = vcmp.eq.s32.totalorder %v190_v50, 1 }
  0x51   :  { %v123_v25 = vsel %vm43_vm2, %v119_v20, 0.0  ;;  %v153_v26 = vadd.f32 %v122_v24, %v121_v21  ;;  %vm193_vm2 = vcmp.eq.s32.totalorder %v190_v50, 0 }
  0x52   :  { %v124_v27 = vsel %vm44_vm3, %v120_v23, 0.0  ;;  %vm202_vm3 = vcmp.eq.s32.totalorder %v192_v51, 0 }
  0x53   :  { %v154_v28 = vadd.f32 %v153_v26, %v123_v25 }
  0x55   :  { %v155_v30 = vadd.f32 %v154_v28, %v124_v27 }
  0x57   :  { %156 = vadd.xlane.f32.xlu0 %v155_v30 }
  0x5b   :  { %168 = vadd.xlane.f32.xlu0 %v167_v1 }
  0xbb   :  { %v181_v31 = vpop.xlane.xlu1 %180 }
  0xbc   :  { %v182_v32 = vrot.slane %v181_v31, 4 }
  0xbe   :  { %v183_v33 = vadd.f32 %v182_v32, %v181_v31 }
  0xc0   :  { %v184_v36 = vrot.slane %v183_v33, 2 }
  0xc2   :  { %v185_v41 = vadd.f32 %v184_v36, %v183_v33 }
  0xc4   :  { %v186_v45 = vrot.slane %v185_v41, 1 }
  0xc6   :  { %v187_v48 = vadd.f32 %v186_v45, %v185_v41 }
  0xe4   :  { %v157_v2 = vpop.xlane.xlu0 %156 }
  0xe5   :  { %v158_v34 = vrot.slane %v157_v2, 4 }
  0xe7   :  { %v159_v35 = vadd.f32 %v158_v34, %v157_v2 }
  0xe8   :  { %v169_v37 = vpop.xlane.xlu0 %168 }
  0xe9   :  { %v160_v38 = vrot.slane %v159_v35, 2  ;;  %v170_v39 = vrot.slane %v169_v37, 4 }
  0xeb   :  { %v171_v3 = vadd.f32 %v170_v39, %v169_v37  ;;  %v161_v40 = vadd.f32 %v160_v38, %v159_v35 }
  0xed   :  { %v172_v42 = vrot.slane %v171_v3, 2  ;;  %v162_v43 = vrot.slane %v161_v40, 1 }
  0xef   :  { %v173_v4 = vadd.f32 %v172_v42, %v171_v3  ;;  %v163_v44 = vadd.f32 %v162_v43, %v161_v40 }
  0xf1   :  { %211 = vpush %v163_v44  ;;  %v174_v46 = vrot.slane %v173_v4, 1 }
  0xf3   :  { %v175_v47 = vadd.f32 %v174_v46, %v173_v4 }
  0xf5   :  { %213 = vpush %v175_v47 }
  0xf6   :  { %215 = vpush %v187_v48 }
 0x122   :  { %s212_s1 = spop %211 }
 0x123   :  { %v200_v55 = vstv %s212_s1 }
 0x126   :  { %s214_s6 = spop %213 }
 0x127   :  { %v198_v52 = vstv %s214_s6  ;;  %s216_s7 = spop %215 }
 0x128   :  { %v196_v53 = vstv %s216_s7 }
 0x129   :  { %v197_v54 = vsel %vm195_vm0, %v196_v53, 0.0 }
 0x12a   :  { %v199_v56 = vsel %vm194_vm1, %v198_v52, %v197_v54 }
 0x12b   :  { %v201_v57 = vsel %vm193_vm2, %v200_v55, %v199_v56 }
 0x12c   :  { %v203_v58 = vsel %vm202_vm3, %v201_v57, 0.0 }
 0x12d   :  { %204 = vst [vmem:[%s458_s2] sm:$0xff] %v203_v58 }
 0x12e   :  { %209 = vsyncpa [#allocation3], 1 }
 0x12f   :  { %210 = vsyncpa [#allocation5], 1 }

</bundles_post_ra>
